<compile_context>
chip_gen: v7x
topology: tpu7x:2x2x1
jax: 0.10.0
libtpu: 0.0.40
codegen_flags: <defaults>
</compile_context>

<pallas_src>
import functools

import jax
import jax.numpy as jnp
from jax.experimental import pallas as pl
from jax.experimental.pallas import tpu as pltpu

BN_EPS = 1e-5
KH = KW = 4
STRIDE = 2
PAD = 1


# ------------------------------ helpers -------------------------------------

def _round_up(x, m):
    return (x + m - 1) // m * m


def spectral_norm_weight(w, u):
    """One power iteration of SpectralNorm (SAGAN-style) on the conv weight."""
    out_ch = w.shape[0]
    w_mat = w.reshape(out_ch, -1)
    l2n = lambda v: v / (jnp.linalg.norm(v) + 1e-12)
    v = l2n(w_mat.T @ u)
    u_new = l2n(w_mat @ v)
    sigma = u_new @ w_mat @ v
    # TODO(synk): PyTorch updates the `u` buffer in-place during training; a
    # single inference forward does not need the write-back.
    return w / sigma


def _im2col_bf16(x_nchw, k_pad, ohw_pad):
    """Reflect-pad by 1, extract 4x4/stride-2 patches in bf16, return
    (N, k_pad, ohw_pad) with rows ordered (c, kh, kw) to match the PyTorch
    conv-weight layout and columns ordered (oh, ow) per image."""
    n, c, h, w = x_nchw.shape
    xb = x_nchw.astype(jnp.bfloat16)                       # cast BEFORE expansion
    xp = jnp.pad(xb, ((0, 0), (0, 0), (PAD, PAD), (PAD, PAD)), mode="reflect")
    oh = (h + 2 * PAD - KH) // STRIDE + 1
    ow = (w + 2 * PAD - KW) // STRIDE + 1
    cols = []
    for i in range(KH):
        for j in range(KW):
            cols.append(xp[:, :, i:i + STRIDE * oh:STRIDE, j:j + STRIDE * ow:STRIDE])
    patches = jnp.stack(cols, axis=2)                      # (N, C, 16, OH, OW)
    patches = patches.reshape(n, c * KH * KW, oh * ow)     # (N, K, OH*OW)
    k_true = c * KH * KW
    if k_pad != k_true or ohw_pad != oh * ow:
        patches = jnp.pad(
            patches, ((0, 0), (0, k_pad - k_true), (0, ohw_pad - oh * ow)))
    # TODO(synk): building the patches in-kernel (strided reads of x) would
    # remove this HBM materialization entirely (review item #3).
    return patches


# ------------------------------ Pallas kernels ------------------------------

def _fused_kernel(m_true, w_ref, a_ref, gb_ref, o_ref,
                  conv_scr, sum_scr, sq_scr, scale_scr, shift_scr):
    """Single-call conv + BN + ReLU.  grid = (phase, image, tile), phase-major.

    phase 0: conv tile -> f32 VMEM scratch; accumulate per-channel sum/sumsq.
    phase boundary (first phase-1 step): fold stats into BN scale/shift.
    phase 1: y = relu(conv * scale + shift) written straight to (N, Cp, OHWp).
    """
    p = pl.program_id(0)
    nb = pl.program_id(1)
    t = pl.program_id(2)
    n_tiles = pl.num_programs(2)
    slot = nb * n_tiles + t

    @pl.when((p == 0) & (nb == 0) & (t == 0))
    def _():
        sum_scr[...] = jnp.zeros_like(sum_scr)
        sq_scr[...] = jnp.zeros_like(sq_scr)

    @pl.when(p == 0)
    def _():
        conv = jnp.dot(w_ref[...], a_ref[...], preferred_element_type=jnp.float32)
        conv_scr[slot] = conv
        sum_scr[...] += jnp.sum(conv, axis=1, keepdims=True)
        sq_scr[...] += jnp.sum(conv * conv, axis=1, keepdims=True)

    @pl.when((p == 1) & (nb == 0) & (t == 0))
    def _():
        # TODO(synk): one-pass variance (E[x^2]-mean^2) can cancel if the
        # activations ever have |mean| >> std; a Welford combine would fix it.
        mean = sum_scr[...] * (1.0 / m_true)
        var = jnp.maximum(sq_scr[...] * (1.0 / m_true) - mean * mean, 0.0)
        inv = jax.lax.rsqrt(var + BN_EPS)
        gb = gb_ref[...]
        gamma = gb[:, 0:1]
        beta = gb[:, 1:2]
        scale_scr[...] = gamma * inv
        shift_scr[...] = beta - mean * gamma * inv

    @pl.when(p == 1)
    def _():
        conv = conv_scr[slot]
        o_ref[...] = jnp.maximum(conv * scale_scr[...] + shift_scr[...], 0.0)
        # TODO(synk): dropout path (use_dropout=True) would use pltpu.prng_seed /
        # pltpu.prng_random_bits here; the default Block config disables it.


def _conv_stats_kernel(w_ref, a_ref, conv_ref, stats_ref):
    """Fallback pass 1: conv tile (bf16 intermediate) + packed per-tile stats."""
    conv = jnp.dot(w_ref[...], a_ref[...], preferred_element_type=jnp.float32)
    conv_ref[...] = conv.astype(conv_ref.dtype)
    stats_ref[:, 0:1] = jnp.sum(conv, axis=1, keepdims=True)
    stats_ref[:, 1:2] = jnp.sum(conv * conv, axis=1, keepdims=True)


def _bn_relu_kernel(conv_ref, scale_ref, shift_ref, o_ref):
    """Fallback pass 2: y = relu(conv * scale + shift)."""
    conv = conv_ref[...].astype(jnp.float32)
    o_ref[...] = jnp.maximum(conv * scale_ref[...] + shift_ref[...], 0.0)


# ------------------------------ forward --------------------------------------

def block_forward(x_nchw, conv_weight, sn_u, gamma, beta, *, force_two_pass=False):
    """x_nchw: (N, Cin, H, W) f32 -> (N, Cout, H//2, W//2) f32."""
    n, cin, h, w = x_nchw.shape
    cout = conv_weight.shape[0]
    oh = (h + 2 * PAD - KH) // STRIDE + 1
    ow = (w + 2 * PAD - KW) // STRIDE + 1
    ohw = oh * ow
    m_true = n * ohw

    k_true = cin * KH * KW
    k_pad = _round_up(k_true, 16)           # bf16 sublane packing only (no 128x pad)
    c_pad = _round_up(cout, 8)

    # ---- generation-gated VMEM / tile plan ---------------------------------
    try:
        vmem_phys = int(pltpu.get_tpu_info().vmem_capacity_bytes)
    except Exception:
        vmem_phys = 64 * 1024 * 1024        # conservative (v7x-sized) fallback
    vmem_limit = int(min(vmem_phys // 2, 64 * 1024 * 1024))   # 64MiB v5e/v6e, 32MiB v7x
    budget = min(vmem_limit // 2, 24 * 1024 * 1024)

    ohw_pad0 = _round_up(ohw, 128)          # lane-dense stores per image
    # double-buffered A tile (bf16) + out tile (f32) + conv tile (bf16, fallback)
    bytes_per_col = 2 * (2 * k_pad) + 2 * (4 * c_pad) + 2 * (2 * c_pad)
    cap = max(128, min(32768, (budget // bytes_per_col) // 128 * 128))
    n_tiles = (ohw_pad0 + cap - 1) // cap
    tile = _round_up((ohw_pad0 + n_tiles - 1) // n_tiles, 128)   # tiles divide evenly
    ohw_pad = tile * n_tiles

    # ---- operands ------------------------------------------------------------
    w_sn = spectral_norm_weight(conv_weight, sn_u)              # (Cout, Cin, 4, 4)
    w_p = jnp.zeros((c_pad, k_pad), jnp.bfloat16).at[:cout, :k_true].set(
        w_sn.reshape(cout, k_true).astype(jnp.bfloat16))
    a_p = _im2col_bf16(x_nchw, k_pad, ohw_pad)                  # (N, Kp, OHWp) bf16

    conv_scr_bytes = n * n_tiles * c_pad * tile * 4
    per_step_bytes = 2 * tile * (2 * k_pad + 4 * c_pad) + c_pad * k_pad * 2
    use_fused = (not force_two_pass) and (
        conv_scr_bytes + per_step_bytes + (1 << 20) <= int(0.6 * vmem_limit))

    if use_fused:
        # ------------- single fused call: conv + BN stats + BN + ReLU --------
        # Sequential ('arbitrary') grid so the VMEM-accumulated stats are global.
        # TODO(synk): on v7x this forgoes megacore; a CMEM cross-core stat
        # reduction at the phase boundary would re-enable it (the kernel is
        # HBM-bound, so the loss is small).
        gb = jnp.zeros((c_pad, 2), jnp.float32)
        gb = gb.at[:cout, 0].set(gamma.astype(jnp.float32))
        gb = gb.at[:cout, 1].set(beta.astype(jnp.float32))

        out3 = pl.pallas_call(
            functools.partial(_fused_kernel, float(m_true)),
            grid=(2, n, n_tiles),
            in_specs=[
                pl.BlockSpec((c_pad, k_pad), lambda p, b, i: (0, 0)),    # W resident
                # A only needed in phase 0: park the index at block 0 in phase 1
                # so it is not re-DMA'd.
                pl.BlockSpec((None, k_pad, tile),
                             lambda p, b, i: (b * (1 - p), 0, i * (1 - p))),
                pl.BlockSpec((c_pad, 2), lambda p, b, i: (0, 0)),        # gamma/beta
            ],
            # Output only written in phase 1: park the index at block 0 in
            # phase 0 so no unwritten buffer is ever flushed.
            out_specs=pl.BlockSpec((None, c_pad, tile),
                                   lambda p, b, i: (b * p, 0, i * p)),
            out_shape=jax.ShapeDtypeStruct((n, c_pad, ohw_pad), jnp.float32),
            scratch_shapes=[
                pltpu.VMEM((n * n_tiles, c_pad, tile), jnp.float32),  # resident conv
                pltpu.VMEM((c_pad, 1), jnp.float32),                  # sum
                pltpu.VMEM((c_pad, 1), jnp.float32),                  # sumsq
                pltpu.VMEM((c_pad, 1), jnp.float32),                  # scale
                pltpu.VMEM((c_pad, 1), jnp.float32),                  # shift
            ],
            compiler_params=pltpu.CompilerParams(
                dimension_semantics=("arbitrary", "arbitrary", "arbitrary"),
                vmem_limit_bytes=vmem_limit),
        )(w_p, a_p, gb)
    else:
        # ------------- fallback: two 'parallel' passes, bf16 conv round trip --
        conv3, stats = pl.pallas_call(
            _conv_stats_kernel,
            grid=(n, n_tiles),
            in_specs=[
                pl.BlockSpec((c_pad, k_pad), lambda b, i: (0, 0)),       # W resident
                pl.BlockSpec((None, k_pad, tile), lambda b, i: (b, 0, i)),
            ],
            out_specs=(
                pl.BlockSpec((None, c_pad, tile), lambda b, i: (b, 0, i)),
                pl.BlockSpec((None, None, c_pad, 2), lambda b, i: (b, i, 0, 0)),
            ),
            out_shape=(
                jax.ShapeDtypeStruct((n, c_pad, ohw_pad), jnp.bfloat16),
                jax.ShapeDtypeStruct((n, n_tiles, c_pad, 2), jnp.float32),
            ),
            compiler_params=pltpu.CompilerParams(
                dimension_semantics=("parallel", "parallel"),
                vmem_limit_bytes=vmem_limit),
        )(w_p, a_p)

        tot = jnp.sum(stats, axis=(0, 1))                    # (Cp, 2)
        mean = tot[:, 0] / m_true
        var = jnp.maximum(tot[:, 1] / m_true - mean * mean, 0.0)
        inv = jax.lax.rsqrt(var + BN_EPS)
        gamma_p = jnp.zeros((c_pad,), jnp.float32).at[:cout].set(gamma.astype(jnp.float32))
        beta_p = jnp.zeros((c_pad,), jnp.float32).at[:cout].set(beta.astype(jnp.float32))
        scale = (gamma_p * inv).reshape(c_pad, 1)
        shift = (beta_p - mean * gamma_p * inv).reshape(c_pad, 1)

        out3 = pl.pallas_call(
            _bn_relu_kernel,
            grid=(n, n_tiles),
            in_specs=[
                pl.BlockSpec((None, c_pad, tile), lambda b, i: (b, 0, i)),
                pl.BlockSpec((c_pad, 1), lambda b, i: (0, 0)),           # resident
                pl.BlockSpec((c_pad, 1), lambda b, i: (0, 0)),           # resident
            ],
            out_specs=pl.BlockSpec((None, c_pad, tile), lambda b, i: (b, 0, i)),
            out_shape=jax.ShapeDtypeStruct((n, c_pad, ohw_pad), jnp.float32),
            compiler_params=pltpu.CompilerParams(
                dimension_semantics=("parallel", "parallel"),
                vmem_limit_bytes=vmem_limit),
        )(conv3, scale, shift)

    # (N, Cp, OHWp) -> (N, Cout, OH, OW): only a channel/lane slice + reshape,
    # no transpose.
    return out3[:, :cout, :ohw].reshape(n, cout, oh, ow)


# ------------------------------ reference ------------------------------------

def reference_forward(x_nchw, conv_weight, sn_u, gamma, beta):
    """Pure-JAX reference (same bf16 conv operands as the kernel path)."""
    w_sn = spectral_norm_weight(conv_weight, sn_u)
    xp = jnp.pad(x_nchw, ((0, 0), (0, 0), (1, 1), (1, 1)), mode="reflect")
    conv = jax.lax.conv_general_dilated(
        xp.astype(jnp.bfloat16), w_sn.astype(jnp.bfloat16),
        window_strides=(STRIDE, STRIDE), padding="VALID",
        dimension_numbers=("NCHW", "OIHW", "NCHW"),
        preferred_element_type=jnp.float32)
    mean = jnp.mean(conv, axis=(0, 2, 3), keepdims=True)
    var = jnp.mean(jnp.square(conv - mean), axis=(0, 2, 3), keepdims=True)
    xhat = (conv - mean) * jax.lax.rsqrt(var + BN_EPS)
    y = xhat * gamma.reshape(1, -1, 1, 1) + beta.reshape(1, -1, 1, 1)
    return jnp.maximum(y, 0.0)


if __name__ == "__main__":
    key = jax.random.PRNGKey(0)
    k_x, k_w, k_u = jax.random.split(key, 3)

    N, C_IN, H, W = 2, 4, 16, 16
    C_OUT = 8

    x = jax.random.normal(k_x, (N, C_IN, H, W), dtype=jnp.float32)
    conv_w = jax.random.normal(k_w, (C_OUT, C_IN, 4, 4), dtype=jnp.float32) * 0.1
    sn_u = jax.random.normal(k_u, (C_OUT,), dtype=jnp.float32)
    gamma = jnp.ones((C_OUT,), dtype=jnp.float32)   # BatchNorm2d default init
    beta = jnp.zeros((C_OUT,), dtype=jnp.float32)

    fwd = jax.jit(block_forward, static_argnames=("force_two_pass",))
    y_ref = jax.block_until_ready(reference_forward(x, conv_w, sn_u, gamma, beta))

    # default: fused single-call path (auto-selected at these sizes)
    y = jax.block_until_ready(fwd(x, conv_w, sn_u, gamma, beta))
    assert y.shape == (N, C_OUT, H // 2, W // 2), y.shape
    err_fused = float(jnp.max(jnp.abs(y - y_ref)))
    assert err_fused < 2e-3, err_fused

    # also exercise the two-pass fallback (bf16 conv intermediate -> looser tol)
    y2 = jax.block_until_ready(fwd(x, conv_w, sn_u, gamma, beta, force_two_pass=True))
    err_two = float(jnp.max(jnp.abs(y2 - y_ref)))
    assert err_two < 3e-2, err_two

    print("KERNEL_OK")
</pallas_src>

<mosaic_0001>
module attributes {stable_mosaic.version = 11 : i64} {
  func.func @_fused_kernel(%arg0: i32, %arg1: i32, %arg2: i32, %arg3: memref<8x64xbf16, #tpu.memory_space<vmem>>, %arg4: memref<1x64x128xbf16, #tpu.memory_space<vmem>>, %arg5: memref<8x2xf32, #tpu.memory_space<vmem>>, %arg6: memref<1x8x128xf32, #tpu.memory_space<vmem>>, %arg7: memref<2x8x128xf32, #tpu.memory_space<vmem>>, %arg8: memref<8x1xf32, #tpu.memory_space<vmem>>, %arg9: memref<8x1xf32, #tpu.memory_space<vmem>>, %arg10: memref<8x1xf32, #tpu.memory_space<vmem>>, %arg11: memref<8x1xf32, #tpu.memory_space<vmem>>) attributes {dimension_semantics = [#tpu.dimension_semantics<arbitrary>, #tpu.dimension_semantics<arbitrary>, #tpu.dimension_semantics<arbitrary>], iteration_bounds = array<i64: 2, 2, 1>, scalar_prefetch = 0 : i64, scratch_operands = 5 : i64, tpu.core_type = #tpu.core_type<tc>, window_params = [{pipeline_mode = #tpu.pipeline_mode<synchronous>, transform_indices = @transform_0, window_bounds = array<i64: 8, 64>}, {transform_indices = @transform_1, window_bounds = array<i64: 1, 64, 128>}, {pipeline_mode = #tpu.pipeline_mode<synchronous>, transform_indices = @transform_2, window_bounds = array<i64: 8, 2>}, {transform_indices = @transform_3, window_bounds = array<i64: 1, 8, 128>}]} {
    %c1_i32 = arith.constant 1 : i32
    %0 = arith.muli %arg1, %c1_i32 : i32
    %1 = arith.addi %0, %arg2 : i32
    %c0_i32 = arith.constant 0 : i32
    %2 = arith.cmpi eq, %arg0, %c0_i32 : i32
    %c0_i32_0 = arith.constant 0 : i32
    %3 = arith.cmpi eq, %arg1, %c0_i32_0 : i32
    %4 = arith.andi %2, %3 : i1
    %c0_i32_1 = arith.constant 0 : i32
    %5 = arith.cmpi eq, %arg2, %c0_i32_1 : i32
    %6 = arith.andi %4, %5 : i1
    %7 = arith.extui %6 : i1 to i32
    %c0_i32_2 = arith.constant 0 : i32
    %8 = arith.cmpi ne, %7, %c0_i32_2 : i32
    scf.if %8 {
      %cst = arith.constant 0.000000e+00 : f32
      %22 = vector.broadcast %cst : f32 to vector<8x1xf32>
      %c0 = arith.constant 0 : index
      %c0_11 = arith.constant 0 : index
      %23 = vector.load %arg8[%c0, %c0_11] : memref<8x1xf32, #tpu.memory_space<vmem>>, vector<8x1xf32>
      tpu.vector_store %arg8[%c0, %c0_11], %22 {strides = array<i32>} : memref<8x1xf32, #tpu.memory_space<vmem>>, vector<8x1xf32>,
      %cst_12 = arith.constant 0.000000e+00 : f32
      %24 = vector.broadcast %cst_12 : f32 to vector<8x1xf32>
      %c0_13 = arith.constant 0 : index
      %c0_14 = arith.constant 0 : index
      %25 = vector.load %arg9[%c0_13, %c0_14] : memref<8x1xf32, #tpu.memory_space<vmem>>, vector<8x1xf32>
      tpu.vector_store %arg9[%c0_13, %c0_14], %24 {strides = array<i32>} : memref<8x1xf32, #tpu.memory_space<vmem>>, vector<8x1xf32>,
    } else {
    }
    %c0_i32_3 = arith.constant 0 : i32
    %9 = arith.cmpi eq, %arg0, %c0_i32_3 : i32
    %10 = arith.extui %9 : i1 to i32
    %c0_i32_4 = arith.constant 0 : i32
    %11 = arith.cmpi ne, %10, %c0_i32_4 : i32
    scf.if %11 {
      %c0 = arith.constant 0 : index
      %c0_11 = arith.constant 0 : index
      %22 = vector.load %arg3[%c0, %c0_11] : memref<8x64xbf16, #tpu.memory_space<vmem>>, vector<8x64xbf16>
      %c0_12 = arith.constant 0 : index
      %c0_13 = arith.constant 0 : index
      %c0_14 = arith.constant 0 : index
      %23 = vector.load %arg4[%c0_12, %c0_13, %c0_14] : memref<1x64x128xbf16, #tpu.memory_space<vmem>>, vector<1x64x128xbf16>
      %24 = vector.shape_cast %23 : vector<1x64x128xbf16> to vector<64x128xbf16>
      %cst = arith.constant dense<0.000000e+00> : vector<8x128xf32>
      %25 = tpu.matmul %22, %24, %cst {dimension_numbers = #tpu.dot_dimension_numbers<[1], [0], [0], [1], [0, 0, 1, 1], [], []>} : vector<8x64xbf16>, vector<64x128xbf16>, vector<8x128xf32> -> vector<8x128xf32>
      %26 = arith.index_cast %1 : i32 to index
      %c0_15 = arith.constant 0 : index
      %c0_16 = arith.constant 0 : index
      %27 = vector.load %arg7[%26, %c0_15, %c0_16] : memref<2x8x128xf32, #tpu.memory_space<vmem>>, vector<1x8x128xf32>
      %28 = vector.shape_cast %27 : vector<1x8x128xf32> to vector<8x128xf32>
      %29 = vector.shape_cast %25 : vector<8x128xf32> to vector<1x8x128xf32>
      tpu.vector_store %arg7[%26, %c0_15, %c0_16], %29 {strides = array<i32>} : memref<2x8x128xf32, #tpu.memory_space<vmem>>, vector<1x8x128xf32>,
      %c0_17 = arith.constant 0 : index
      %c0_18 = arith.constant 0 : index
      %30 = vector.load %arg8[%c0_17, %c0_18] : memref<8x1xf32, #tpu.memory_space<vmem>>, vector<8x1xf32>
      %cst_19 = arith.constant dense<0.000000e+00> : vector<8xf32>
      %31 = vector.multi_reduction <add>, %25, %cst_19 [1] : vector<8x128xf32> to vector<8xf32>
      %32 = vector.shape_cast %31 : vector<8xf32> to vector<8x1xf32>
      %33 = arith.addf %30, %32 : vector<8x1xf32>
      %c0_20 = arith.constant 0 : index
      %c0_21 = arith.constant 0 : index
      %34 = vector.load %arg8[%c0_20, %c0_21] : memref<8x1xf32, #tpu.memory_space<vmem>>, vector<8x1xf32>
      tpu.vector_store %arg8[%c0_20, %c0_21], %33 {strides = array<i32>} : memref<8x1xf32, #tpu.memory_space<vmem>>, vector<8x1xf32>,
      %c0_22 = arith.constant 0 : index
      %c0_23 = arith.constant 0 : index
      %35 = vector.load %arg9[%c0_22, %c0_23] : memref<8x1xf32, #tpu.memory_space<vmem>>, vector<8x1xf32>
      %36 = arith.mulf %25, %25 : vector<8x128xf32>
      %cst_24 = arith.constant dense<0.000000e+00> : vector<8xf32>
      %37 = vector.multi_reduction <add>, %36, %cst_24 [1] : vector<8x128xf32> to vector<8xf32>
      %38 = vector.shape_cast %37 : vector<8xf32> to vector<8x1xf32>
      %39 = arith.addf %35, %38 : vector<8x1xf32>
      %c0_25 = arith.constant 0 : index
      %c0_26 = arith.constant 0 : index
      %40 = vector.load %arg9[%c0_25, %c0_26] : memref<8x1xf32, #tpu.memory_space<vmem>>, vector<8x1xf32>
      tpu.vector_store %arg9[%c0_25, %c0_26], %39 {strides = array<i32>} : memref<8x1xf32, #tpu.memory_space<vmem>>, vector<8x1xf32>,
    } else {
    }
    %c1_i32_5 = arith.constant 1 : i32
    %12 = arith.cmpi eq, %arg0, %c1_i32_5 : i32
    %c0_i32_6 = arith.constant 0 : i32
    %13 = arith.cmpi eq, %arg1, %c0_i32_6 : i32
    %14 = arith.andi %12, %13 : i1
    %c0_i32_7 = arith.constant 0 : i32
    %15 = arith.cmpi eq, %arg2, %c0_i32_7 : i32
    %16 = arith.andi %14, %15 : i1
    %17 = arith.extui %16 : i1 to i32
    %c0_i32_8 = arith.constant 0 : i32
    %18 = arith.cmpi ne, %17, %c0_i32_8 : i32
    scf.if %18 {
      %c0 = arith.constant 0 : index
      %c0_11 = arith.constant 0 : index
      %22 = vector.load %arg8[%c0, %c0_11] : memref<8x1xf32, #tpu.memory_space<vmem>>, vector<8x1xf32>
      %cst = arith.constant 7.812500e-03 : f32
      %23 = vector.broadcast %cst : f32 to vector<8x1xf32>
      %24 = arith.mulf %22, %23 : vector<8x1xf32>
      %c0_12 = arith.constant 0 : index
      %c0_13 = arith.constant 0 : index
      %25 = vector.load %arg9[%c0_12, %c0_13] : memref<8x1xf32, #tpu.memory_space<vmem>>, vector<8x1xf32>
      %cst_14 = arith.constant 7.812500e-03 : f32
      %26 = vector.broadcast %cst_14 : f32 to vector<8x1xf32>
      %27 = arith.mulf %25, %26 : vector<8x1xf32>
      %28 = arith.mulf %24, %24 : vector<8x1xf32>
      %29 = arith.subf %27, %28 : vector<8x1xf32>
      %cst_15 = arith.constant 0.000000e+00 : f32
      %30 = vector.broadcast %cst_15 : f32 to vector<8x1xf32>
      %31 = arith.maximumf %29, %30 : vector<8x1xf32>
      %cst_16 = arith.constant 9.99999974E-6 : f32
      %32 = vector.broadcast %cst_16 : f32 to vector<8x1xf32>
      %33 = arith.addf %31, %32 : vector<8x1xf32>
      %34 = math.rsqrt %33 : vector<8x1xf32>
      %c0_17 = arith.constant 0 : index
      %c0_18 = arith.constant 0 : index
      %35 = vector.load %arg5[%c0_17, %c0_18] : memref<8x2xf32, #tpu.memory_space<vmem>>, vector<8x2xf32>
      %36 = vector.extract_strided_slice %35 {offsets = [0, 0], sizes = [8, 1], strides = [1, 1]} : vector<8x2xf32> to vector<8x1xf32>
      %37 = vector.extract_strided_slice %35 {offsets = [0, 1], sizes = [8, 1], strides = [1, 1]} : vector<8x2xf32> to vector<8x1xf32>
      %38 = arith.mulf %36, %34 : vector<8x1xf32>
      %c0_19 = arith.constant 0 : index
      %c0_20 = arith.constant 0 : index
      %39 = vector.load %arg10[%c0_19, %c0_20] : memref<8x1xf32, #tpu.memory_space<vmem>>, vector<8x1xf32>
      tpu.vector_store %arg10[%c0_19, %c0_20], %38 {strides = array<i32>} : memref<8x1xf32, #tpu.memory_space<vmem>>, vector<8x1xf32>,
      %40 = arith.mulf %24, %36 : vector<8x1xf32>
      %41 = arith.mulf %40, %34 : vector<8x1xf32>
      %42 = arith.subf %37, %41 : vector<8x1xf32>
      %c0_21 = arith.constant 0 : index
      %c0_22 = arith.constant 0 : index
      %43 = vector.load %arg11[%c0_21, %c0_22] : memref<8x1xf32, #tpu.memory_space<vmem>>, vector<8x1xf32>
      tpu.vector_store %arg11[%c0_21, %c0_22], %42 {strides = array<i32>} : memref<8x1xf32, #tpu.memory_space<vmem>>, vector<8x1xf32>,
    } else {
    }
    %c1_i32_9 = arith.constant 1 : i32
    %19 = arith.cmpi eq, %arg0, %c1_i32_9 : i32
    %20 = arith.extui %19 : i1 to i32
    %c0_i32_10 = arith.constant 0 : i32
    %21 = arith.cmpi ne, %20, %c0_i32_10 : i32
    scf.if %21 {
      %22 = arith.index_cast %1 : i32 to index
      %c0 = arith.constant 0 : index
      %c0_11 = arith.constant 0 : index
      %23 = vector.load %arg7[%22, %c0, %c0_11] : memref<2x8x128xf32, #tpu.memory_space<vmem>>, vector<1x8x128xf32>
      %24 = vector.shape_cast %23 : vector<1x8x128xf32> to vector<8x128xf32>
      %c0_12 = arith.constant 0 : index
      %c0_13 = arith.constant 0 : index
      %25 = vector.load %arg10[%c0_12, %c0_13] : memref<8x1xf32, #tpu.memory_space<vmem>>, vector<8x1xf32>
      %26 = vector.broadcast %25 : vector<8x1xf32> to vector<8x128xf32>
      %27 = arith.mulf %24, %26 : vector<8x128xf32>
      %c0_14 = arith.constant 0 : index
      %c0_15 = arith.constant 0 : index
      %28 = vector.load %arg11[%c0_14, %c0_15] : memref<8x1xf32, #tpu.memory_space<vmem>>, vector<8x1xf32>
      %29 = vector.broadcast %28 : vector<8x1xf32> to vector<8x128xf32>
      %30 = arith.addf %27, %29 : vector<8x128xf32>
      %cst = arith.constant 0.000000e+00 : f32
      %31 = vector.broadcast %cst : f32 to vector<8x128xf32>
      %32 = arith.maximumf %30, %31 : vector<8x128xf32>
      %c0_16 = arith.constant 0 : index
      %c0_17 = arith.constant 0 : index
      %c0_18 = arith.constant 0 : index
      %33 = vector.load %arg6[%c0_16, %c0_17, %c0_18] : memref<1x8x128xf32, #tpu.memory_space<vmem>>, vector<1x8x128xf32>
      %34 = vector.shape_cast %33 : vector<1x8x128xf32> to vector<8x128xf32>
      %35 = vector.shape_cast %32 : vector<8x128xf32> to vector<1x8x128xf32>
      tpu.vector_store %arg6[%c0_16, %c0_17, %c0_18], %35 {strides = array<i32>} : memref<1x8x128xf32, #tpu.memory_space<vmem>>, vector<1x8x128xf32>,
    } else {
    }
    return
  }
  func.func @transform_0(%arg0: i32, %arg1: i32, %arg2: i32) -> (i32, i32) {
    %c0_i32 = arith.constant 0 : i32
    %c0_i32_0 = arith.constant 0 : i32
    %c0_i32_1 = arith.constant 0 : i32
    return %c0_i32, %c0_i32_0 : i32, i32
  }
  func.func @transform_1(%arg0: i32, %arg1: i32, %arg2: i32) -> (i32, i32, i32) {
    %c1_i32 = arith.constant 1 : i32
    %0 = arith.subi %c1_i32, %arg0 : i32
    %1 = arith.muli %arg1, %0 : i32
    %c1_i32_0 = arith.constant 1 : i32
    %2 = arith.subi %c1_i32_0, %arg0 : i32
    %3 = arith.muli %arg2, %2 : i32
    %c0_i32 = arith.constant 0 : i32
    %c0_i32_1 = arith.constant 0 : i32
    return %1, %c0_i32, %3 : i32, i32, i32
  }
  func.func @transform_2(%arg0: i32, %arg1: i32, %arg2: i32) -> (i32, i32) {
    %c0_i32 = arith.constant 0 : i32
    %c0_i32_0 = arith.constant 0 : i32
    %c0_i32_1 = arith.constant 0 : i32
    return %c0_i32, %c0_i32_0 : i32, i32
  }
  func.func @transform_3(%arg0: i32, %arg1: i32, %arg2: i32) -> (i32, i32, i32) {
    %0 = arith.muli %arg1, %arg0 : i32
    %1 = arith.muli %arg2, %arg0 : i32
    %c0_i32 = arith.constant 0 : i32
    %c0_i32_0 = arith.constant 0 : i32
    return %0, %c0_i32, %1 : i32, i32, i32
  }
}

</mosaic_0001>

<bundles_post_ra>
// kernel: block_forward.1
= control target key start
LH: loop header
LB: loop body
LE: loop exit
PB: predicated region body
PF: predicated region fallthrough
CT: control target
= control target key end

     0   :  { %s655_s12 = smov 0   ;;  %s657_s13 = smov 0   ;;  %s734_s0 = inlined_call_operand.vmem [shape: bf16[8,64], index: 0, kind: input, shape index: {}]   ;;  %s735_s1 = inlined_call_operand.vmem [shape: bf16[2,64,128], index: 1, kind: input, shape index: {}]   ;;  %s736_s2 = inlined_call_operand.vmem [shape: f32[8,2], index: 2, kind: input, shape index: {}]   ;;  %s737_s3 = inlined_call_operand.vmem [shape: f32[2,8,128], index: 3, kind: output, shape index: {}]  }
   0x1   :  { %s659_s14 = smov 0   ;;  %s661_s15 = smov 0  }
   0x2   :  { %s663_s16 = smov 0  }
   0x3 LB: > { %s28_s17 = sadd.s32 1, %s619_s14  ;;  %s32_s18 = sadd.s32 1, %s623_s15  ;;  %s627_s16 = sphi %s663_s16, %s13_s16   ;;  %s623_s15 = sphi %s661_s15, %s741_s15   ;;  %s619_s14 = sphi %s659_s14, %s740_s14   ;;  %s615_s13 = sphi %s657_s13, %s739_s13   ;;  %s611_s12 = sphi %s655_s12, %s738_s12  }
   0x4   : > { %p30_p0 = scmp.ge.s32.totalorder %s28_s17, 2  ;;  %p501_p1 = scmp.ge.s32.totalorder %s627_s16, 1 }
   0x5   : > { %p179_p2 = scmp.lt.s32.totalorder %s627_s16, 5 }
   0x6   : > { %s743_s17 = smov (%p30_p0, %s28_s17), 0  ;;  %s745_s18 = smov (!%p30_p0, %s32_s18), %s623_s15 }
   0x7   : > { %p180_p3 = pnand %p501_p1, %p179_p2  ;;  %p34_p4 = scmp.ge.s32.totalorder %s745_s18, 2 }
   0x8   : > { %s213_s19 = ssub.s32 (!%p180_p3), 1, %s615_s13  ;;  %s227_s20 = smul.u32 (!%p180_p3), %s611_s12, %s615_s13 }
   0x9   : > { %s747_s18 = smov (%p34_p4, %s745_s18), 0  ;;  %183 = sbr.rel (%p180_p3) target bundleno = 806 (0x326), region = 32 }
   0xa   : > { %s214_s21 = smul.u32 (!%p180_p3), %s611_s12, %s213_s19  ;;  %p240_p5 = scmp.eq.s32.totalorder (!%p180_p3), %s615_s13, 0 }
   0xb   : > { %p229_p6 = scmp.lt.s32.totalorder (!%p180_p3), %s227_s20, 1  ;;  %p241_p7 = scmp.eq.s32.totalorder (!%p180_p3), %s611_s12, 0 }
   0xc   : > { %p216_p8 = scmp.lt.s32.totalorder (!%p180_p3), %s214_s21, 1 }
   0xd   : > { %p242_p9 = pnand (!%p180_p3), %p241_p7, %p240_p5 }
  0x10   : > { %s749_s20 = smov (!%p229_p6, %s227_s20), 1  ;;  %s751_s21 = smov (!%p216_p8, %s214_s21), 1 }
  0x11   : > { %s504_s22 = sshll.u32 %s749_s20, 3  ;;  %s518_s23 = sshll.u32 %s751_s21, 5  ;;  %vm249_vm0 = vcmask (!%p242_p9), 7168   ;;  %v629_v0 = vmov (!%p242_p9), 0.0  }
  0x12   : > { %s700_s26 = scalar_lea.vmem %s737_s3, %s504_s22  ;;  %s223_s29 = scalar_lea.vmem %s735_s1, %s518_s23  ;;  %250 = vst.msk [vmem:[#allocation3] sm:$0xff] (!%p242_p9), %vm249_vm0, %v629_v0  ;;  %251 = vst.msk [vmem:[#allocation4] sm:$0xff] (!%p242_p9), %vm249_vm0, %v629_v0 }
  0x13   : > { %248 = sbr.rel (%p242_p9) target bundleno = 26 (0x1a), region = 36 }
  0x1a PF: > { %p506_p10 = scmp.ne.s32.totalorder %s615_s13, 0 }
  0x1b   : > { %v582_v1 = vld [vmem:[%s223_s29] sm:$0xff] (!%p506_p10)   ;;  %v630_v2 = vmov (!%p506_p10), 0.0   ;;  %v583_v3 = vld [vmem:[%s223_s29 + $0x8] sm:$0xff] (!%p506_p10)   ;;  %vm631_vm1 = vmmov (!%p506_p10), 0   ;;  %v584_v4 = vld [vmem:[%s223_s29 + $0x10] sm:$0xff] (!%p506_p10)   ;;  %vm288_vm2 = vcmask (!%p506_p10), 523264  }
  0x1c   : > { %254 = sbr.rel (%p506_p10) target bundleno = 405 (0x195), region = 40  ;;  %524 = vmatprep.subr.bf16.mxu0 (!%p506_p10), %v630_v2  ;;  %532 = vmatprep.mubr.msk.bf16.mxu0 (!%p506_p10), %vm631_vm1, %v630_v2  ;;  %v585_v5 = vld [vmem:[%s223_s29 + $0x18] sm:$0xff] (!%p506_p10)   ;;  %v255_v6 = vld [vmem:[%s734_s0] sm:$0xf] (!%p506_p10)  ;;  %s512_s5 = sshll.u32 (!%p506_p10), %s611_s12, 3  ;;  %v335_v12 = vld [vmem:[#allocation3] sm:$0xff] (!%p506_p10) }
  0x1d   : > { %525 = vmatpush3.bf16.msra.mxu0 (!%p506_p10), %v582_v1  ;;  %s333_s6 = scalar_lea.vmem (!%p506_p10), [#allocation2], %s512_s5  ;;  %vm339_vm3 = vcmask (!%p506_p10), 7168   ;;  %v341_v15 = vld [vmem:[#allocation4] sm:$0xff] (!%p506_p10) }
  0x1e   : > { %526 = vmatprep.subr.bf16.mxu0 (!%p506_p10), %v630_v2 }
  0x21   : > { %527 = vmatpush3.bf16.msra.mxu0 (!%p506_p10), %v583_v3 }
  0x22   : > { %528 = vmatprep.subr.bf16.mxu0 (!%p506_p10), %v630_v2 }
  0x25   : > { %529 = vmatpush3.bf16.msra.mxu0 %v584_v4 }
  0x26   : > { %530 = vmatprep.subr.bf16.mxu0 %v630_v2 }
  0x29   : > { %531 = vmatpush3.bf16.msra.mxu0 %v585_v5 }
  0x2c   : > { %533 = vmatmul.mubr.msk.bf16.vlgmr.msra.gmra.mrb[0].mxu0 %vm288_vm2, %v255_v6 }
  0xff   : > { %v326_v7 = vpop.f32.mrb[0].mxu0 }
 0x100   : > { %334 = vst [vmem:[%s333_s6] sm:$0xff] %v326_v7  ;;  %336 = vadd.xlane.f32.xlu0 %v326_v7  ;;  %v534_v8 = vpop.f32.mrb[1].mxu0  ;;  %v342_v11 = vmul.f32 %v326_v7, %v326_v7 }
 0x101   : > { %v329_v9 = vpop.f32.mrb[2].mxu0 }
 0x102   : > { %v535_v10 = vpop.f32.mrb[3].mxu0 }
 0x104   : > { %343 = vadd.xlane.f32.xlu0 %v342_v11 }
 0x18d   : > { %v337_v13 = vpop.xlane.xlu0 %336 }
 0x18e   : > { %v338_v14 = vadd.f32 %v337_v13, %v335_v12 }
 0x190   : > { %340 = vst.msk [vmem:[#allocation3] sm:$0xff] %vm339_vm3, %v338_v14 }
 0x191   : > { %v344_v16 = vpop.xlane.xlu0 %343 }
 0x192   : > { %v345_v17 = vadd.f32 %v344_v16, %v341_v15 }
 0x194   : > { %346 = vst.msk [vmem:[#allocation4] sm:$0xff] %vm339_vm3, %v345_v17 }
 0x195 PF: > { %p347_p11 = scmp.eq.s32.totalorder %s615_s13, 1 }
 0x197   : > { %p348_p12 = pnand %p347_p11, %p241_p7 }
 0x198   : > { %v354_v18 = vld [vmem:[#allocation3] sm:$0xff] (!%p348_p12)  ;;  %v363_v26 = vld [vmem:[%s736_s2] sm:$0xff] (!%p348_p12)  ;;  %s632_s9 = smov (!%p348_p12), 1   ;;  %vm365_vm4 = vcmask (!%p348_p12), 7168   ;;  %s633_s10 = smov (!%p348_p12), 127  }
 0x199   : > { %353 = sbr.rel (%p348_p12) target bundleno = 666 (0x29a), region = 44  ;;  %v355_v20 = vmul.f32 (!%p348_p12), 0.0078125, %v354_v18 }
 0x19b   : > { %v356_v19 = vld [vmem:[#allocation4] sm:$0xff] (!%p348_p12)  ;;  %v358_v22 = vmul.f32 (!%p348_p12), %v355_v20, %v355_v20  ;;  %v367_v27 = vmul.f32 (!%p348_p12), %v363_v26, %v355_v20 }
 0x19c   : > { %v357_v21 = vmul.f32 (!%p348_p12), 0.0078125, %v356_v19 }
 0x19e   : > { %v359_v23 = vsub.f32 (!%p348_p12), %v357_v21, %v358_v22 }
 0x1a0   : > { %v360_v24 = vmax.f32 %v359_v23, 0.0 }
 0x1a2   : > { %v361_v25 = vadd.f32 1e-05, %v360_v24 }
 0x1a4   : > { %586 = vrsqrt.f32 %v361_v25 }
 0x1ae   : > { %v587_v28 = vpop.eup %586 }
 0x1af   : > { %v368_v29 = vmul.f32 %v587_v28, %v367_v27  ;;  %v364_v30 = vmul.f32 %v587_v28, %v363_v26 }
 0x1b1   : > { %370 = vrot.lane.b32.xlu0 %v368_v29, %s632_s9  ;;  %366 = vst.msk [vmem:[#allocation5] sm:$0xff] %vm365_vm4, %v364_v30 }
 0x223   : > { %v371_v31 = vpop.permute.xlu0 %370 }
 0x224   : > { %v373_v32 = vsub.f32 %v363_v26, %v371_v31 }
 0x226   : > { %375 = vrot.lane.b32.xlu0 %v373_v32, %s633_s10 }
 0x298   : > { %v376_v33 = vpop.permute.xlu0 %375 }
 0x299   : > { %378 = vst.msk [vmem:[#allocation6] sm:$0xff] %vm365_vm4, %v376_v33 }
 0x29a PF: > { %p514_p13 = scmp.ne.s32.totalorder %s615_s13, 1 }
 0x29b   : > { %v385_v34 = vld [vmem:[#allocation5] sm:$0xff] (!%p514_p13)  ;;  %v634_v35 = vmov (!%p514_p13), 0   ;;  %s515_s11 = sshll.u32 (!%p514_p13), %s611_s12, 3 }
 0x29c   : > { %381 = sbr.rel (%p514_p13) target bundleno = 806 (0x326), region = 48  ;;  %588 = vset.pattern.permute.xlu0 (!%p514_p13), %v634_v35  ;;  %s383_s19 = scalar_lea.vmem (!%p514_p13), [#allocation2], %s515_s11 }
 0x29d   : > { %388 = vperm.xlu0 (!%p514_p13), %588, %v385_v34   ;;  %v384_v38 = vld [vmem:[%s383_s19] sm:$0xff] (!%p514_p13) }
 0x2a0   : > { %v392_v36 = vld [vmem:[#allocation6] sm:$0xff] (!%p514_p13) }
 0x2a1   : > { %395 = vperm.xlu0 (!%p514_p13), %588, %v392_v36  }
 0x31c   : > { %v389_v37 = vpop.permute.xlu0 %388 }
 0x31d   : > { %v391_v39 = vmul.f32 %v389_v37, %v384_v38 }
 0x320   : > { %v396_v40 = vpop.permute.xlu0 %395 }
 0x321   : > { %v398_v41 = vadd.f32 %v396_v40, %v391_v39 }
 0x323   : > { %v399_v42 = vmax.f32 %v398_v41, 0.0 }
 0x325   : > { %400 = vst [vmem:[%s700_s26] sm:$0xff] %v399_v42 }
 0x326 PF: > { %s13_s16 = sadd.s32 1, %s627_s16   ;;  %s738_s12 = smov %s619_s14 }
 0x327   : > { %p10_p0 = scmp.ge.s32.totalorder %s13_s16, 6   ;;  %s739_s13 = smov %s623_s15 }
 0x328   : > { %s740_s14 = smov %s743_s17  ;;  %s741_s15 = smov %s747_s18 }
 0x329   :  { %12 = sbr.rel (!%p10_p0) target bundleno = 3 (0x3), region = 80 }

</bundles_post_ra>
